<compile_context>
chip_gen: v7x
topology: tpu7x:2x2x1
jax: 0.10.0
libtpu: 0.0.40
codegen_flags: <defaults>
</compile_context>

<pallas_src>
import functools

import numpy as np
import jax
import jax.numpy as jnp
from jax.experimental import pallas as pl
from jax.experimental.pallas import tpu as pltpu

_POS_PAD = 1e30   # padded positive score  -> sur == 0 against every negative
_NEG_PAD = -1e30  # padded negative score  -> sur == 0, exp == 1 exactly

_TP_MAX = 256     # lane tile over positives (multiple of 128)
_TN_MAX = 1024    # sublane tile over negatives (multiple of 8)
_P_BUCKET = 128   # pad positives to multiples of this
_N_BUCKET = 256   # pad negatives to multiples of this (fewer recompiles)
# TODO(synk): for training loops with highly variable positive/negative counts,
# raise the bucket sizes further (or pre-bucket host-side) so the pallas_call
# shape set stays small and Mosaic does not recompile per batch.


def _round_up(x, m):
    return ((x + m - 1) // m) * m


def _pauc_dro_kernel(margin, inv_lambda, gamma, inv_n, n_pad_count,
                     fps_ref, fns_ref, u_ref, unew_ref, lterm_ref,
                     s1_ref, s2_ref):
    """Grid = (P tiles [parallel], N tiles [arbitrary/reduction])."""
    k = pl.program_id(1)

    @pl.when(k == 0)
    def _():
        s1_ref[...] = jnp.zeros_like(s1_ref)
        s2_ref[...] = jnp.zeros_like(s2_ref)

    fps = fps_ref[...]                        # (1, TP)  positives, lane-dense
    fns = fns_ref[...]                        # (TN, 1)  negatives on sublanes
    diff = fps - fns                          # (TN, TP) = f_ps[p] - f_ns[n]
    hinge = jnp.maximum(margin - diff, 0.0)   # squared-hinge surrogate
    sur = hinge * hinge
    e = jnp.exp(sur * inv_lambda)             # EUP-bound exp (mul, not div)
    s1_ref[...] += jnp.sum(e, axis=0, keepdims=True)         # (1, TP)
    s2_ref[...] += jnp.sum(e * sur, axis=0, keepdims=True)   # (1, TP)

    @pl.when(k == pl.num_programs(1) - 1)
    def _():
        # Padded negative rows contribute exactly exp(0)=1 to S1 and 0 to S2;
        # remove their (static) count before forming the true row mean.
        s1_valid = s1_ref[...] - n_pad_count
        u_new = (1.0 - gamma) * u_ref[...] + gamma * (s1_valid * inv_n)
        unew_ref[...] = u_new                       # lane-dense (1, TP) store
        # sum_n p*sur per positive == S2 / u_new  (only P divides total)
        lterm_ref[...] = s2_ref[...] / u_new


def pauc_dro_pallas(f_ps, f_ns, u_old, *, margin=1.0, Lambda=1.0, gamma=0.1):
    """Hot path of pAUC_DRO_Loss.forward as a tiled Pallas kernel.

    f_ps : (P,) or (P,1) positive scores
    f_ns : (N,) or (N,1) negative scores
    u_old: (P,) or (P,1) gathered DRO state u_pos[index_p]
    Returns (scalar loss, (P,1) updated state).
    """
    P = int(np.prod(f_ps.shape))
    N = int(np.prod(f_ns.shape))
    assert P >= 1 and N >= 1, "need at least one positive and one negative"

    # --- tile / padding geometry (all static Python ints) ---
    TP = min(_round_up(P, _P_BUCKET), _TP_MAX)
    P_pad = _round_up(P, TP)
    N_bucket = _round_up(N, _N_BUCKET)
    TN = min(N_bucket, _TN_MAX)
    N_pad = _round_up(N_bucket, TN)

    # --- pad inputs; positives / state are lane-dense rows ---
    fps_row = jnp.full((1, P_pad), _POS_PAD, jnp.float32)
    fps_row = fps_row.at[0, :P].set(jnp.asarray(f_ps, jnp.float32).reshape(-1))
    fns_col = jnp.full((N_pad, 1), _NEG_PAD, jnp.float32)
    fns_col = fns_col.at[:N, 0].set(jnp.asarray(f_ns, jnp.float32).reshape(-1))
    u_row = jnp.ones((1, P_pad), jnp.float32)  # pad with 1.0: safe divisor
    u_row = u_row.at[0, :P].set(jnp.asarray(u_old, jnp.float32).reshape(-1))

    kernel = functools.partial(
        _pauc_dro_kernel,
        float(margin), 1.0 / float(Lambda), float(gamma),
        1.0 / float(N), float(N_pad - N))

    grid = (P_pad // TP, N_pad // TN)

    u_new_row, lterm = pl.pallas_call(
        kernel,
        grid_spec=pltpu.PrefetchScalarGridSpec(
            num_scalar_prefetch=0,
            grid=grid,
            in_specs=[
                pl.BlockSpec((1, TP), lambda i, k: (0, i)),   # f_ps (lane-dense)
                pl.BlockSpec((TN, 1), lambda i, k: (k, 0)),   # f_ns (sublanes)
                pl.BlockSpec((1, TP), lambda i, k: (0, i)),   # u_old
            ],
            out_specs=[
                pl.BlockSpec((1, TP), lambda i, k: (0, i)),   # u_new
                pl.BlockSpec((1, TP), lambda i, k: (0, i)),   # per-pos loss term
            ],
            scratch_shapes=[
                pltpu.VMEM((1, TP), jnp.float32),   # S1 accumulator
                pltpu.VMEM((1, TP), jnp.float32),   # S2 accumulator
            ],
        ),
        out_shape=[
            jax.ShapeDtypeStruct((1, P_pad), jnp.float32),
            jax.ShapeDtypeStruct((1, P_pad), jnp.float32),
        ],
        compiler_params=pltpu.CompilerParams(
            dimension_semantics=("parallel", "arbitrary"),
            vmem_limit_bytes=32 * 1024 * 1024),
    )(fps_row, fns_col, u_row)

    # loss = mean over the true (P, N) matrix of p * sur
    loss = jnp.sum(lterm[0, :P]) * (1.0 / float(P * N))
    u_new = u_new_row[0, :P].reshape(P, 1)
    return loss, u_new


class PAUCDROLoss:
    """JAX/Pallas port of libauc pAUC_DRO_Loss (forward only)."""

    def __init__(self, pos_len, gamma=0.1, margin=1.0, Lambda=1.0):
        self.u_pos = jnp.zeros((pos_len, 1), jnp.float32)
        self.gamma = float(gamma)
        self.margin = float(margin)
        self.Lambda = float(Lambda)

    def __call__(self, y_pred, y_true, index_p):
        # Boolean filtering has data-dependent shapes -> host-side glue.
        y_pred = np.asarray(y_pred, np.float32).reshape(-1)
        y_true = np.asarray(y_true).reshape(-1)
        index_p = np.asarray(index_p).reshape(-1)
        f_ps = y_pred[y_true == 1]
        f_ns = y_pred[y_true == 0]
        idx = index_p[index_p >= 0].astype(np.int32)

        u_old = self.u_pos[jnp.asarray(idx)]              # gather state
        loss, u_new = pauc_dro_pallas(
            jnp.asarray(f_ps), jnp.asarray(f_ns), u_old,
            margin=self.margin, Lambda=self.Lambda, gamma=self.gamma)
        # scatter updated state back (matches self.u_pos[index_p] = ...)
        self.u_pos = self.u_pos.at[jnp.asarray(idx)].set(u_new)
        return loss


def _reference_numpy(y_pred, y_true, index_p, u_pos, margin, Lambda, gamma):
    y_pred = np.asarray(y_pred, np.float64).reshape(-1, 1)
    y_true = np.asarray(y_true).reshape(-1, 1)
    index_p = np.asarray(index_p).reshape(-1)
    f_ps = y_pred[y_true == 1].reshape(-1, 1)
    f_ns = y_pred[y_true == 0].reshape(-1)
    idx = index_p[index_p >= 0]
    u_pos = np.asarray(u_pos, np.float64).copy()
    mat = np.tile(f_ns, (len(f_ps), 1))
    sur = np.maximum(margin - (f_ps - mat), 0.0) ** 2
    exp_loss = np.exp(sur / Lambda)
    u_pos[idx] = (1 - gamma) * u_pos[idx] + gamma * exp_loss.mean(1, keepdims=True)
    p = exp_loss / u_pos[idx]
    return float(np.mean(p * sur)), u_pos


if __name__ == "__main__":
    pos_len = 8
    batch = 16
    key = jax.random.PRNGKey(0)
    y_pred = jax.random.normal(key, (batch, 1), dtype=jnp.float32)

    # first 6 samples are positives, rest negatives
    y_true = np.zeros((batch, 1), np.int32)
    y_true[:6] = 1
    # dataset indices of the positive samples; -1 for negatives
    index_p = np.full((batch,), -1, np.int32)
    index_p[:6] = np.arange(6, dtype=np.int32)

    loss_mod = PAUCDROLoss(pos_len, gamma=0.1, margin=1.0, Lambda=1.0)
    u_before = np.asarray(loss_mod.u_pos)

    loss = loss_mod(y_pred, y_true, index_p)
    loss = jax.block_until_ready(loss)
    u_after = np.asarray(jax.block_until_ready(loss_mod.u_pos))

    ref_loss, ref_u = _reference_numpy(
        np.asarray(y_pred), y_true, index_p, u_before, 1.0, 1.0, 0.1)

    assert np.allclose(float(loss), ref_loss, rtol=1e-4, atol=1e-5), \
        (float(loss), ref_loss)
    assert np.allclose(u_after, ref_u, rtol=1e-4, atol=1e-6), \
        (u_after.ravel(), ref_u.ravel())
    print("KERNEL_OK")
</pallas_src>

<mosaic_0001>
module attributes {stable_mosaic.version = 11 : i64} {
  func.func @_pauc_dro_kernel(%arg0: i32, %arg1: i32, %arg2: memref<1x128xf32, #tpu.memory_space<vmem>>, %arg3: memref<256x1xf32, #tpu.memory_space<vmem>>, %arg4: memref<1x128xf32, #tpu.memory_space<vmem>>, %arg5: memref<1x128xf32, #tpu.memory_space<vmem>>, %arg6: memref<1x128xf32, #tpu.memory_space<vmem>>, %arg7: memref<1x128xf32, #tpu.memory_space<vmem>>, %arg8: memref<1x128xf32, #tpu.memory_space<vmem>>) attributes {dimension_semantics = [#tpu.dimension_semantics<parallel>, #tpu.dimension_semantics<arbitrary>], iteration_bounds = array<i64: 1, 1>, scalar_prefetch = 0 : i64, scratch_operands = 2 : i64, tpu.core_type = #tpu.core_type<tc>, window_params = [{transform_indices = @transform_0, window_bounds = array<i64: 1, 128>}, {transform_indices = @transform_1, window_bounds = array<i64: 256, 1>}, {transform_indices = @transform_2, window_bounds = array<i64: 1, 128>}, {transform_indices = @transform_3, window_bounds = array<i64: 1, 128>}, {transform_indices = @transform_4, window_bounds = array<i64: 1, 128>}]} {
    %c0_i32 = arith.constant 0 : i32
    %0 = arith.cmpi eq, %arg1, %c0_i32 : i32
    %1 = arith.extui %0 : i1 to i32
    %c0_i32_0 = arith.constant 0 : i32
    %2 = arith.cmpi ne, %1, %c0_i32_0 : i32
    scf.if %2 {
      %cst_18 = arith.constant 0.000000e+00 : f32
      %30 = vector.broadcast %cst_18 : f32 to vector<1x128xf32>
      %c0_19 = arith.constant 0 : index
      %c0_20 = arith.constant 0 : index
      %31 = vector.load %arg7[%c0_19, %c0_20] : memref<1x128xf32, #tpu.memory_space<vmem>>, vector<1x128xf32>
      tpu.vector_store %arg7[%c0_19, %c0_20], %30 {strides = array<i32>} : memref<1x128xf32, #tpu.memory_space<vmem>>, vector<1x128xf32>,
      %cst_21 = arith.constant 0.000000e+00 : f32
      %32 = vector.broadcast %cst_21 : f32 to vector<1x128xf32>
      %c0_22 = arith.constant 0 : index
      %c0_23 = arith.constant 0 : index
      %33 = vector.load %arg8[%c0_22, %c0_23] : memref<1x128xf32, #tpu.memory_space<vmem>>, vector<1x128xf32>
      tpu.vector_store %arg8[%c0_22, %c0_23], %32 {strides = array<i32>} : memref<1x128xf32, #tpu.memory_space<vmem>>, vector<1x128xf32>,
    } else {
    }
    %c0 = arith.constant 0 : index
    %c0_1 = arith.constant 0 : index
    %3 = vector.load %arg2[%c0, %c0_1] : memref<1x128xf32, #tpu.memory_space<vmem>>, vector<1x128xf32>
    %c0_2 = arith.constant 0 : index
    %c0_3 = arith.constant 0 : index
    %4 = vector.load %arg3[%c0_2, %c0_3] : memref<256x1xf32, #tpu.memory_space<vmem>>, vector<256x1xf32>
    %5 = vector.broadcast %3 : vector<1x128xf32> to vector<256x128xf32>
    %6 = vector.broadcast %4 : vector<256x1xf32> to vector<256x128xf32>
    %7 = arith.subf %5, %6 : vector<256x128xf32>
    %cst = arith.constant 1.000000e+00 : f32
    %8 = vector.broadcast %cst : f32 to vector<256x128xf32>
    %9 = arith.subf %8, %7 : vector<256x128xf32>
    %cst_4 = arith.constant 0.000000e+00 : f32
    %10 = vector.broadcast %cst_4 : f32 to vector<256x128xf32>
    %11 = arith.maximumf %9, %10 : vector<256x128xf32>
    %12 = arith.mulf %11, %11 : vector<256x128xf32>
    %cst_5 = arith.constant 1.000000e+00 : f32
    %13 = vector.broadcast %cst_5 : f32 to vector<256x128xf32>
    %14 = arith.mulf %12, %13 : vector<256x128xf32>
    %15 = math.exp %14 : vector<256x128xf32>
    %c0_6 = arith.constant 0 : index
    %c0_7 = arith.constant 0 : index
    %16 = vector.load %arg7[%c0_6, %c0_7] : memref<1x128xf32, #tpu.memory_space<vmem>>, vector<1x128xf32>
    %cst_8 = arith.constant dense<0.000000e+00> : vector<128xf32>
    %17 = vector.multi_reduction <add>, %15, %cst_8 [0] : vector<256x128xf32> to vector<128xf32>
    %18 = vector.shape_cast %17 : vector<128xf32> to vector<1x128xf32>
    %19 = arith.addf %16, %18 : vector<1x128xf32>
    %c0_9 = arith.constant 0 : index
    %c0_10 = arith.constant 0 : index
    %20 = vector.load %arg7[%c0_9, %c0_10] : memref<1x128xf32, #tpu.memory_space<vmem>>, vector<1x128xf32>
    tpu.vector_store %arg7[%c0_9, %c0_10], %19 {strides = array<i32>} : memref<1x128xf32, #tpu.memory_space<vmem>>, vector<1x128xf32>,
    %c0_11 = arith.constant 0 : index
    %c0_12 = arith.constant 0 : index
    %21 = vector.load %arg8[%c0_11, %c0_12] : memref<1x128xf32, #tpu.memory_space<vmem>>, vector<1x128xf32>
    %22 = arith.mulf %15, %12 : vector<256x128xf32>
    %cst_13 = arith.constant dense<0.000000e+00> : vector<128xf32>
    %23 = vector.multi_reduction <add>, %22, %cst_13 [0] : vector<256x128xf32> to vector<128xf32>
    %24 = vector.shape_cast %23 : vector<128xf32> to vector<1x128xf32>
    %25 = arith.addf %21, %24 : vector<1x128xf32>
    %c0_14 = arith.constant 0 : index
    %c0_15 = arith.constant 0 : index
    %26 = vector.load %arg8[%c0_14, %c0_15] : memref<1x128xf32, #tpu.memory_space<vmem>>, vector<1x128xf32>
    tpu.vector_store %arg8[%c0_14, %c0_15], %25 {strides = array<i32>} : memref<1x128xf32, #tpu.memory_space<vmem>>, vector<1x128xf32>,
    %c0_i32_16 = arith.constant 0 : i32
    %27 = arith.cmpi eq, %arg1, %c0_i32_16 : i32
    %28 = arith.extui %27 : i1 to i32
    %c0_i32_17 = arith.constant 0 : i32
    %29 = arith.cmpi ne, %28, %c0_i32_17 : i32
    scf.if %29 {
      %c0_18 = arith.constant 0 : index
      %c0_19 = arith.constant 0 : index
      %30 = vector.load %arg7[%c0_18, %c0_19] : memref<1x128xf32, #tpu.memory_space<vmem>>, vector<1x128xf32>
      %cst_20 = arith.constant 2.460000e+02 : f32
      %31 = vector.broadcast %cst_20 : f32 to vector<1x128xf32>
      %32 = arith.subf %30, %31 : vector<1x128xf32>
      %c0_21 = arith.constant 0 : index
      %c0_22 = arith.constant 0 : index
      %33 = vector.load %arg4[%c0_21, %c0_22] : memref<1x128xf32, #tpu.memory_space<vmem>>, vector<1x128xf32>
      %cst_23 = arith.constant 0.899999976 : f32
      %34 = vector.broadcast %cst_23 : f32 to vector<1x128xf32>
      %35 = arith.mulf %34, %33 : vector<1x128xf32>
      %cst_24 = arith.constant 1.000000e-01 : f32
      %36 = vector.broadcast %cst_24 : f32 to vector<1x128xf32>
      %37 = arith.mulf %32, %36 : vector<1x128xf32>
      %cst_25 = arith.constant 1.000000e-01 : f32
      %38 = vector.broadcast %cst_25 : f32 to vector<1x128xf32>
      %39 = arith.mulf %38, %37 : vector<1x128xf32>
      %40 = arith.addf %35, %39 : vector<1x128xf32>
      %c0_26 = arith.constant 0 : index
      %c0_27 = arith.constant 0 : index
      %41 = vector.load %arg5[%c0_26, %c0_27] : memref<1x128xf32, #tpu.memory_space<vmem>>, vector<1x128xf32>
      tpu.vector_store %arg5[%c0_26, %c0_27], %40 {strides = array<i32>} : memref<1x128xf32, #tpu.memory_space<vmem>>, vector<1x128xf32>,
      %c0_28 = arith.constant 0 : index
      %c0_29 = arith.constant 0 : index
      %42 = vector.load %arg8[%c0_28, %c0_29] : memref<1x128xf32, #tpu.memory_space<vmem>>, vector<1x128xf32>
      %43 = arith.divf %42, %40 : vector<1x128xf32>
      %c0_30 = arith.constant 0 : index
      %c0_31 = arith.constant 0 : index
      %44 = vector.load %arg6[%c0_30, %c0_31] : memref<1x128xf32, #tpu.memory_space<vmem>>, vector<1x128xf32>
      tpu.vector_store %arg6[%c0_30, %c0_31], %43 {strides = array<i32>} : memref<1x128xf32, #tpu.memory_space<vmem>>, vector<1x128xf32>,
    } else {
    }
    return
  }
  func.func @transform_0(%arg0: i32, %arg1: i32) -> (i32, i32) {
    %c0_i32 = arith.constant 0 : i32
    %c0_i32_0 = arith.constant 0 : i32
    return %c0_i32, %arg0 : i32, i32
  }
  func.func @transform_1(%arg0: i32, %arg1: i32) -> (i32, i32) {
    %c0_i32 = arith.constant 0 : i32
    %c0_i32_0 = arith.constant 0 : i32
    return %arg1, %c0_i32 : i32, i32
  }
  func.func @transform_2(%arg0: i32, %arg1: i32) -> (i32, i32) {
    %c0_i32 = arith.constant 0 : i32
    %c0_i32_0 = arith.constant 0 : i32
    return %c0_i32, %arg0 : i32, i32
  }
  func.func @transform_3(%arg0: i32, %arg1: i32) -> (i32, i32) {
    %c0_i32 = arith.constant 0 : i32
    %c0_i32_0 = arith.constant 0 : i32
    return %c0_i32, %arg0 : i32, i32
  }
  func.func @transform_4(%arg0: i32, %arg1: i32) -> (i32, i32) {
    %c0_i32 = arith.constant 0 : i32
    %c0_i32_0 = arith.constant 0 : i32
    return %c0_i32, %arg0 : i32, i32
  }
}

</mosaic_0001>

<bundles_post_ra>
// kernel: tpu_custom_call.1
= control target key start
LH: loop header
LB: loop body
LE: loop exit
PB: predicated region body
PF: predicated region fallthrough
CT: control target
= control target key end

     0   :  { %10 = vsyncpa [#allocation5], 0  ;;  %v692_v2 = vmov 0   ;;  %s981_s0 = inlined_call_operand.vmem [shape: f32[1,128], index: 0, kind: input, shape index: {}]   ;;  %s982_s1 = inlined_call_operand.vmem [shape: f32[256,1], index: 1, kind: input, shape index: {}]   ;;  %s983_s2 = inlined_call_operand.vmem [shape: f32[1,128], index: 2, kind: input, shape index: {}]   ;;  %s984_s3 = inlined_call_operand.hbm [shape: f32[1,128], index: 3, kind: output, shape index: {0}]   ;;  %s985_s4 = inlined_call_operand.hbm [shape: f32[1,128], index: 4, kind: output, shape index: {1}]  }
   0x1   :  { %v27_v0 = vld [vmem:[%s982_s1 + $0x10] sm:$0xff]  ;;  %v25_v1 = vld [vmem:[%s982_s1] sm:$0xff]  ;;  %577 = vset.pattern.permute.xlu1 %v692_v2  ;;  %576 = vset.pattern.permute.xlu0 %v692_v2  ;;  %v28_v3 = vld [vmem:[%s982_s1 + $0x18] sm:$0xff] }
   0x2   :  { %75 = vperm.xlu1 %577, %v27_v0   ;;  %65 = vperm.xlu0 %576, %v25_v1   ;;  %v26_v4 = vld [vmem:[%s982_s1 + $0x8] sm:$0xff]  ;;  %v29_v6 = vld [vmem:[%s982_s1 + $0x20] sm:$0xff]  ;;  %v32_v7 = vld [vmem:[%s982_s1 + $0x38] sm:$0xff] }
   0x3   :  { %v30_v5 = vld [vmem:[%s982_s1 + $0x28] sm:$0xff]  ;;  %v31_v8 = vld [vmem:[%s982_s1 + $0x30] sm:$0xff] }
   0x6   :  { %80 = vperm.xlu1 %577, %v28_v3   ;;  %70 = vperm.xlu0 %576, %v26_v4  }
   0xa   :  { %90 = vperm.xlu1 %577, %v30_v5   ;;  %85 = vperm.xlu0 %576, %v29_v6  }
   0xb   :  { %11 = vsyncpa [#allocation7], 0  ;;  %v34_v9 = vld [vmem:[%s982_s1 + $0x48] sm:$0xff]  ;;  %v33_v10 = vld [vmem:[%s982_s1 + $0x40] sm:$0xff]  ;;  %v693_v33 = vmov 0.0   ;;  %s694_s29 = smov [#allocation4]  }
   0xc   :  { %v36_v11 = vld [vmem:[%s982_s1 + $0x58] sm:$0xff]  ;;  %v35_v12 = vld [vmem:[%s982_s1 + $0x50] sm:$0xff]  ;;  %v38_v13 = vld [vmem:[%s982_s1 + $0x68] sm:$0xff]  ;;  %22 = vst [vmem:[#allocation2] sm:$0x1] %v693_v33  ;;  %s548_s30 = sshll.u32 %s694_s29, 4  ;;  %s549_s30 = int_to_ptr.vmem [resolvable:$true] %s548_s30 }
   0xd   :  { %v37_v14 = vld [vmem:[%s982_s1 + $0x60] sm:$0xff]  ;;  %v40_v15 = vld [vmem:[%s982_s1 + $0x78] sm:$0xff]  ;;  %v39_v16 = vld [vmem:[%s982_s1 + $0x70] sm:$0xff]  ;;  %23 = vst [vmem:[#allocation3] sm:$0x1] %v693_v33  ;;  %s644_s5 = scalar_lea.vmem %s549_s30, 16  ;;  %p649_p1 = scmp.lt.s32.totalorder %s549_s30, %s549_s30 }
   0xe   :  { %100 = vperm.xlu1 %577, %v32_v7   ;;  %95 = vperm.xlu0 %576, %v31_v8   ;;  %v42_v17 = vld [vmem:[%s982_s1 + $0x88] sm:$0xff]  ;;  %v41_v18 = vld [vmem:[%s982_s1 + $0x80] sm:$0xff]  ;;  %v44_v19 = vld [vmem:[%s982_s1 + $0x98] sm:$0xff]  ;;  %p645_p0 = scmp.ne.s32.totalorder %s549_s30, %s644_s5  ;;  %s648_s6 = scalar_lea.vmem %s549_s30, 32 }
   0xf   :  { %v43_v20 = vld [vmem:[%s982_s1 + $0x90] sm:$0xff]  ;;  %v46_v21 = vld [vmem:[%s982_s1 + $0xa8] sm:$0xff]  ;;  %v45_v22 = vld [vmem:[%s982_s1 + $0xa0] sm:$0xff]  ;;  %p650_p2 = scmp.lt.s32.totalorder %s648_s6, %s644_s5 }
  0x10   :  { %v48_v23 = vld [vmem:[%s982_s1 + $0xb8] sm:$0xff]  ;;  %v47_v24 = vld [vmem:[%s982_s1 + $0xb0] sm:$0xff]  ;;  %v50_v25 = vld [vmem:[%s982_s1 + $0xc8] sm:$0xff] }
  0x11   :  { %v49_v26 = vld [vmem:[%s982_s1 + $0xc0] sm:$0xff]  ;;  %v52_v27 = vld [vmem:[%s982_s1 + $0xd8] sm:$0xff]  ;;  %v51_v28 = vld [vmem:[%s982_s1 + $0xd0] sm:$0xff]  ;;  %p651_p3 = por %p650_p2, %p649_p1 }
  0x12   :  { %110 = vperm.xlu1 %577, %v34_v9   ;;  %105 = vperm.xlu0 %576, %v33_v10   ;;  %v54_v29 = vld [vmem:[%s982_s1 + $0xe8] sm:$0xff]  ;;  %v53_v30 = vld [vmem:[%s982_s1 + $0xe0] sm:$0xff]  ;;  %v56_v31 = vld [vmem:[%s982_s1 + $0xf8] sm:$0xff] }
  0x13   :  { %v55_v32 = vld [vmem:[%s982_s1 + $0xf0] sm:$0xff]  ;;  %v820_v34 = vld [vmem:[%s981_s0] ss:$0 sm:$0xff]  ;;  %p652_p4 = pnand %p651_p3, %p645_p0 }
  0x16   :  { %120 = vperm.xlu1 %577, %v36_v11   ;;  %115 = vperm.xlu0 %576, %v35_v12  }
  0x1a   :  { %130 = vperm.xlu1 %577, %v38_v13   ;;  %125 = vperm.xlu0 %576, %v37_v14  }
  0x1e   :  { %140 = vperm.xlu1 %577, %v40_v15   ;;  %135 = vperm.xlu0 %576, %v39_v16  }
  0x22   :  { %150 = vperm.xlu1 %577, %v42_v17   ;;  %145 = vperm.xlu0 %576, %v41_v18  }
  0x26   :  { %160 = vperm.xlu1 %577, %v44_v19   ;;  %155 = vperm.xlu0 %576, %v43_v20  }
  0x2a   :  { %170 = vperm.xlu1 %577, %v46_v21   ;;  %165 = vperm.xlu0 %576, %v45_v22  }
  0x2e   :  { %180 = vperm.xlu1 %577, %v48_v23   ;;  %175 = vperm.xlu0 %576, %v47_v24  }
  0x32   :  { %190 = vperm.xlu1 %577, %v50_v25   ;;  %185 = vperm.xlu0 %576, %v49_v26  }
  0x36   :  { %200 = vperm.xlu1 %577, %v52_v27   ;;  %195 = vperm.xlu0 %576, %v51_v28  }
  0x3a   :  { %210 = vperm.xlu1 %577, %v54_v29   ;;  %205 = vperm.xlu0 %576, %v53_v30  }
  0x3e   :  { %220 = vperm.xlu1 %577, %v56_v31   ;;  %215 = vperm.xlu0 %576, %v55_v32  }
  0x81   :  { %v76_v35 = vpop.permute.xlu1 %75  ;;  %v66_v36 = vpop.permute.xlu0 %65 }
  0x82   :  { %v225_v37 = vsub.f32 %v820_v34, %v76_v35  ;;  %v223_v38 = vsub.f32 %v820_v34, %v66_v36 }
  0x84   :  { %v257_v39 = vsub.f32 1.0, %v225_v37  ;;  %v255_v40 = vsub.f32 1.0, %v223_v38 }
  0x85   :  { %v81_v41 = vpop.permute.xlu1 %80  ;;  %v71_v42 = vpop.permute.xlu0 %70 }
  0x86   :  { %v289_v43 = vmax.f32 %v257_v39, 0.0  ;;  %v287_v44 = vmax.f32 %v255_v40, 0.0  ;;  %v226_v45 = vsub.f32 %v820_v34, %v81_v41  ;;  %v224_v46 = vsub.f32 %v820_v34, %v71_v42 }
  0x88   :  { %v321_v47 = vmul.f32 %v289_v43, %v289_v43  ;;  %v826_v48 = vmul.f32 %v287_v44, %v287_v44  ;;  %v258_v49 = vsub.f32 1.0, %v226_v45  ;;  %v256_v50 = vsub.f32 1.0, %v224_v46 }
  0x89   :  { %v91_v51 = vpop.permute.xlu1 %90  ;;  %v86_v52 = vpop.permute.xlu0 %85 }
  0x8a   :  { %v355_v53 = vmul.f32 1.442695, %v321_v47  ;;  %v351_v54 = vmul.f32 1.442695, %v826_v48  ;;  %v290_v55 = vmax.f32 %v258_v49, 0.0  ;;  %v288_v56 = vmax.f32 %v256_v50, 0.0 }
  0x8b   :  { %v228_v57 = vsub.f32 %v820_v34, %v91_v51  ;;  %v227_v58 = vsub.f32 %v820_v34, %v86_v52 }
  0x8c   :  { %578 = vpow2.f32 %v355_v53  ;;  %v831_v59 = vmul.f32 %v290_v55, %v290_v55  ;;  %v320_v60 = vmul.f32 %v288_v56, %v288_v56 }
  0x8d   :  { %v260_v61 = vsub.f32 1.0, %v228_v57  ;;  %v259_v62 = vsub.f32 1.0, %v227_v58  ;;  %v101_v63 = vpop.permute.xlu1 %100  ;;  %v96_v0 = vpop.permute.xlu0 %95  ;;  %580 = vpow2.f32 %v351_v54 }
  0x8e   :  { %v353_v1 = vmul.f32 1.442695, %v320_v60  ;;  %v230_v2 = vsub.f32 %v820_v34, %v101_v63  ;;  %v229_v3 = vsub.f32 %v820_v34, %v96_v0  ;;  %v357_v4 = vmul.f32 1.442695, %v831_v59 }
  0x8f   :  { %v292_v5 = vmax.f32 %v260_v61, 0.0  ;;  %v291_v6 = vmax.f32 %v259_v62, 0.0 }
  0x90   :  { %v262_v7 = vsub.f32 1.0, %v230_v2  ;;  %v261_v8 = vsub.f32 1.0, %v229_v3  ;;  %582 = vpow2.f32 %v353_v1 }
  0x91   :  { %v836_v9 = vmul.f32 %v292_v5, %v292_v5  ;;  %v838_v10 = vmul.f32 %v291_v6, %v291_v6  ;;  %v111_v11 = vpop.permute.xlu1 %110  ;;  %v106_v12 = vpop.permute.xlu0 %105  ;;  %584 = vpow2.f32 %v357_v4 }
  0x92   :  { %v294_v13 = vmax.f32 %v262_v7, 0.0  ;;  %v293_v14 = vmax.f32 %v261_v8, 0.0  ;;  %v232_v15 = vsub.f32 %v820_v34, %v111_v11  ;;  %v231_v16 = vsub.f32 %v820_v34, %v106_v12 }
  0x93   :  { %v361_v17 = vmul.f32 1.442695, %v836_v9  ;;  %v359_v18 = vmul.f32 1.442695, %v838_v10 }
  0x94   :  { %v844_v19 = vmul.f32 %v294_v13, %v294_v13  ;;  %v846_v20 = vmul.f32 %v293_v14, %v293_v14  ;;  %v264_v21 = vsub.f32 1.0, %v232_v15  ;;  %v263_v22 = vsub.f32 1.0, %v231_v16 }
  0x95   :  { %586 = vpow2.f32 %v361_v17  ;;  %v121_v23 = vpop.permute.xlu1 %120  ;;  %v116_v24 = vpop.permute.xlu0 %115 }
  0x96   :  { %v579_v25 = vpop.eup %578  ;;  %588 = vpow2.f32 %v359_v18  ;;  %v365_v26 = vmul.f32 1.442695, %v844_v19  ;;  %v363_v27 = vmul.f32 1.442695, %v846_v20  ;;  %v296_v28 = vmax.f32 %v264_v21, 0.0 }
  0x97   :  { %v295_v29 = vmax.f32 %v263_v22, 0.0  ;;  %v234_v30 = vsub.f32 %v820_v34, %v121_v23  ;;  %v233_v31 = vsub.f32 %v820_v34, %v116_v24  ;;  %v581_v32 = vpop.eup %580  ;;  %v458_v33 = vmul.f32 %v579_v25, %v321_v47 }
  0x98   :  { %v852_v35 = vmul.f32 %v296_v28, %v296_v28  ;;  %590 = vpow2.f32 %v363_v27  ;;  %v456_v45 = vmul.f32 %v581_v32, %v826_v48 }
  0x99   :  { %v854_v36 = vmul.f32 %v295_v29, %v295_v29  ;;  %v266_v37 = vsub.f32 1.0, %v234_v30  ;;  %v265_v38 = vsub.f32 1.0, %v233_v31  ;;  %v131_v39 = vpop.permute.xlu1 %130  ;;  %v126_v40 = vpop.permute.xlu0 %125  ;;  %592 = vpow2.f32 %v365_v26 }
  0x9a   :  { %v369_v41 = vmul.f32 1.442695, %v852_v35  ;;  %v236_v42 = vsub.f32 %v820_v34, %v131_v39  ;;  %v235_v43 = vsub.f32 %v820_v34, %v126_v40  ;;  %v583_v44 = vpop.eup %582 }
  0x9b   :  { %v367_v46 = vmul.f32 1.442695, %v854_v36  ;;  %v298_v47 = vmax.f32 %v266_v37, 0.0  ;;  %v297_v49 = vmax.f32 %v265_v38, 0.0  ;;  %v416_v50 = vadd.f32 %v583_v44, %v581_v32  ;;  %v585_v53 = vpop.eup %584 }
  0x9c   :  { %v457_v51 = vmul.f32 %v583_v44, %v320_v60  ;;  %594 = vpow2.f32 %v369_v41  ;;  %v268_v52 = vsub.f32 1.0, %v236_v42  ;;  %v267_v56 = vsub.f32 1.0, %v235_v43 }
  0x9d   :  { %596 = vpow2.f32 %v367_v46  ;;  %v861_v54 = vmul.f32 %v298_v47, %v298_v47  ;;  %v863_v55 = vmul.f32 %v297_v49, %v297_v49  ;;  %v141_v57 = vpop.permute.xlu1 %140  ;;  %v136_v58 = vpop.permute.xlu0 %135  ;;  %v417_v61 = vadd.f32 %v579_v25, %v416_v50 }
  0x9e   :  { %v488_v62 = vadd.f32 %v457_v51, %v456_v45  ;;  %v300_v48 = vmax.f32 %v268_v52, 0.0  ;;  %v238_v63 = vsub.f32 %v820_v34, %v141_v57  ;;  %v299_v2 = vmax.f32 %v267_v56, 0.0 }
  0x9f   :  { %v587_v0 = vpop.eup %586  ;;  %v373_v1 = vmul.f32 1.442695, %v861_v54  ;;  %v371_v60 = vmul.f32 1.442695, %v863_v55  ;;  %v237_v3 = vsub.f32 %v820_v34, %v136_v58  ;;  %v459_v5 = vmul.f32 %v585_v53, %v831_v59 }
  0xa0   :  { %v589_v4 = vpop.eup %588  ;;  %v489_v6 = vadd.f32 %v488_v62, %v458_v33  ;;  %v418_v7 = vadd.f32 %v585_v53, %v417_v61  ;;  %v870_v8 = vmul.f32 %v300_v48, %v300_v48  ;;  %v873_v12 = vmul.f32 %v299_v2, %v299_v2 }
  0xa1   :  { %v460_v11 = vmul.f32 %v589_v4, %v838_v10  ;;  %598 = vpow2.f32 %v373_v1  ;;  %v270_v13 = vsub.f32 1.0, %v238_v63  ;;  %v151_v14 = vpop.permute.xlu1 %150  ;;  %v146_v15 = vpop.permute.xlu0 %145  ;;  %v461_v59 = vmul.f32 %v587_v0, %v836_v9 }
  0xa2   :  { %v419_v16 = vadd.f32 %v589_v4, %v418_v7  ;;  %v490_v17 = vadd.f32 %v489_v6, %v459_v5  ;;  %600 = vpow2.f32 %v371_v60  ;;  %v377_v18 = vmul.f32 1.442695, %v870_v8  ;;  %v591_v21 = vpop.eup %590 }
  0xa3   :  { %v375_v22 = vmul.f32 1.442695, %v873_v12  ;;  %v302_v23 = vmax.f32 %v270_v13, 0.0  ;;  %v269_v24 = vsub.f32 1.0, %v237_v3  ;;  %v593_v25 = vpop.eup %592  ;;  %v462_v27 = vmul.f32 %v591_v21, %v846_v20 }
  0xa4   :  { %v491_v10 = vadd.f32 %v490_v17, %v460_v11  ;;  %v420_v26 = vadd.f32 %v587_v0, %v419_v16  ;;  %602 = vpow2.f32 %v377_v18  ;;  %v240_v30 = vsub.f32 %v820_v34, %v151_v14 }
  0xa5   :  { %604 = vpow2.f32 %v375_v22  ;;  %v879_v28 = vmul.f32 %v302_v23, %v302_v23  ;;  %v301_v29 = vmax.f32 %v269_v24, 0.0  ;;  %v161_v31 = vpop.permute.xlu1 %160  ;;  %v156_v32 = vpop.permute.xlu0 %155  ;;  %v239_v38 = vsub.f32 %v820_v34, %v146_v15 }
  0xa6   :  { %v595_v33 = vpop.eup %594  ;;  %v421_v9 = vadd.f32 %v591_v21, %v420_v26  ;;  %v492_v37 = vadd.f32 %v491_v10, %v461_v59  ;;  %v242_v39 = vsub.f32 %v820_v34, %v161_v31  ;;  %v463_v41 = vmul.f32 %v593_v25, %v844_v19 }
  0xa7   :  { %v597_v40 = vpop.eup %596  ;;  %v381_v20 = vmul.f32 1.442695, %v879_v28  ;;  %v886_v42 = vmul.f32 %v301_v29, %v301_v29  ;;  %v272_v43 = vsub.f32 1.0, %v240_v30  ;;  %v271_v47 = vsub.f32 1.0, %v239_v38 }
  0xa8   :  { %v493_v44 = vadd.f32 %v492_v37, %v462_v27  ;;  %v422_v45 = vadd.f32 %v593_v25, %v421_v9  ;;  %v464_v46 = vmul.f32 %v597_v40, %v854_v36  ;;  %v274_v51 = vsub.f32 1.0, %v242_v39 }
  0xa9   :  { %606 = vpow2.f32 %v381_v20  ;;  %v379_v49 = vmul.f32 1.442695, %v886_v42  ;;  %v304_v50 = vmax.f32 %v272_v43, 0.0  ;;  %v171_v52 = vpop.permute.xlu1 %170  ;;  %v166_v53 = vpop.permute.xlu0 %165  ;;  %v303_v19 = vmax.f32 %v271_v47, 0.0 }
  0xaa   :  { %v423_v56 = vadd.f32 %v597_v40, %v422_v45  ;;  %v494_v57 = vadd.f32 %v493_v44, %v463_v41  ;;  %v241_v58 = vsub.f32 %v820_v34, %v156_v32  ;;  %v306_v48 = vmax.f32 %v274_v51, 0.0 }
  0xab   :  { %v599_v61 = vpop.eup %598  ;;  %608 = vpow2.f32 %v379_v49  ;;  %v891_v62 = vmul.f32 %v304_v50, %v304_v50  ;;  %v244_v36 = vsub.f32 %v820_v34, %v171_v52  ;;  %v465_v0 = vmul.f32 %v595_v33, %v852_v35 }
  0xac   :  { %v601_v63 = vpop.eup %600  ;;  %v495_v1 = vadd.f32 %v494_v57, %v464_v46  ;;  %v424_v60 = vadd.f32 %v595_v33, %v423_v56  ;;  %v895_v2 = vmul.f32 %v303_v19, %v303_v19  ;;  %v899_v5 = vmul.f32 %v306_v48, %v306_v48 }
  0xad   :  { %v466_v3 = vmul.f32 %v601_v63, %v863_v55  ;;  %v385_v4 = vmul.f32 1.442695, %v891_v62  ;;  %v273_v6 = vsub.f32 1.0, %v241_v58  ;;  %v181_v7 = vpop.permute.xlu1 %180  ;;  %v176_v11 = vpop.permute.xlu0 %175  ;;  %v276_v17 = vsub.f32 1.0, %v244_v36 }
  0xae   :  { %v603_v13 = vpop.eup %602  ;;  %v425_v14 = vadd.f32 %v601_v63, %v424_v60  ;;  %v496_v15 = vadd.f32 %v495_v1, %v465_v0  ;;  %v383_v16 = vmul.f32 1.442695, %v895_v2  ;;  %v467_v18 = vmul.f32 %v599_v61, %v861_v54 }
  0xaf   :  { %v605_v35 = vpop.eup %604  ;;  %v469_v21 = vmul.f32 %v603_v13, %v870_v8  ;;  %610 = vpow2.f32 %v385_v4  ;;  %v305_v55 = vmax.f32 %v273_v6, 0.0  ;;  %v389_v23 = vmul.f32 1.442695, %v899_v5 }
  0xb0   :  { %v497_v59 = vadd.f32 %v496_v15, %v466_v3  ;;  %v426_v22 = vadd.f32 %v599_v61, %v425_v14  ;;  %612 = vpow2.f32 %v383_v16  ;;  %v468_v24 = vmul.f32 %v605_v35, %v873_v12 }
  0xb1   :  { %v906_v25 = vmul.f32 %v305_v55, %v305_v55  ;;  %v308_v10 = vmax.f32 %v276_v17, 0.0  ;;  %v243_v26 = vsub.f32 %v820_v34, %v166_v53  ;;  %v191_v27 = vpop.permute.xlu1 %190  ;;  %v186_v29 = vpop.permute.xlu0 %185  ;;  %v246_v8 = vsub.f32 %v820_v34, %v181_v7 }
  0xb2   :  { %v427_v30 = vadd.f32 %v605_v35, %v426_v22  ;;  %v498_v54 = vadd.f32 %v497_v59, %v467_v18  ;;  %v245_v31 = vsub.f32 %v820_v34, %v176_v11  ;;  %v248_v12 = vsub.f32 %v820_v34, %v191_v27 }
  0xb3   :  { %v607_v32 = vpop.eup %606  ;;  %v387_v33 = vmul.f32 1.442695, %v906_v25  ;;  %v912_v9 = vmul.f32 %v308_v10, %v308_v10  ;;  %v275_v37 = vsub.f32 1.0, %v243_v26  ;;  %614 = vpow2.f32 %v389_v23 }
  0xb4   :  { %v499_v38 = vadd.f32 %v498_v54, %v468_v24  ;;  %v428_v39 = vadd.f32 %v603_v13, %v427_v30  ;;  %v278_v40 = vsub.f32 1.0, %v246_v8  ;;  %v277_v44 = vsub.f32 1.0, %v245_v31 }
  0xb5   :  { %v609_v41 = vpop.eup %608  ;;  %616 = vpow2.f32 %v387_v33  ;;  %v393_v20 = vmul.f32 1.442695, %v912_v9  ;;  %v307_v43 = vmax.f32 %v275_v37, 0.0  ;;  %v201_v45 = vpop.permute.xlu1 %200  ;;  %v471_v52 = vmul.f32 %v607_v32, %v879_v28 }
  0xb6   :  { %v196_v46 = vpop.permute.xlu0 %195  ;;  %v429_v47 = vadd.f32 %v609_v41, %v428_v39  ;;  %v470_v49 = vmul.f32 %v609_v41, %v886_v42  ;;  %v500_v50 = vadd.f32 %v499_v38, %v469_v21  ;;  %v310_v51 = vmax.f32 %v278_v40, 0.0 }
  0xb7   :  { %v918_v53 = vmul.f32 %v307_v43, %v307_v43  ;;  %v309_v56 = vmax.f32 %v277_v44, 0.0  ;;  %v280_v57 = vsub.f32 1.0, %v248_v12  ;;  %v247_v48 = vsub.f32 %v820_v34, %v186_v29 }
  0xb8   :  { %v501_v19 = vadd.f32 %v500_v50, %v470_v49  ;;  %v430_v58 = vadd.f32 %v607_v32, %v429_v47  ;;  %v920_v61 = vmul.f32 %v310_v51, %v310_v51  ;;  %v250_v1 = vsub.f32 %v820_v34, %v201_v45 }
  0xb9   :  { %v611_v36 = vpop.eup %610  ;;  %v391_v63 = vmul.f32 1.442695, %v918_v53  ;;  %v924_v0 = vmul.f32 %v309_v56, %v309_v56  ;;  %v312_v42 = vmax.f32 %v280_v57, 0.0  ;;  %v211_v60 = vpop.permute.xlu1 %210  ;;  %618 = vpow2.f32 %v393_v20 }
  0xba   :  { %v613_v28 = vpop.eup %612  ;;  %v502_v3 = vadd.f32 %v501_v19, %v471_v52  ;;  %v397_v4 = vmul.f32 1.442695, %v920_v61  ;;  %v279_v6 = vsub.f32 1.0, %v247_v48  ;;  %v206_v14 = vpop.permute.xlu0 %205  ;;  %v473_v15 = vmul.f32 %v611_v36, %v891_v62 }
  0xbb   :  { %v431_v7 = vadd.f32 %v613_v28, %v430_v58  ;;  %v472_v11 = vmul.f32 %v613_v28, %v895_v2  ;;  %620 = vpow2.f32 %v391_v63  ;;  %v395_v13 = vmul.f32 1.442695, %v924_v0 }
  0xbc   :  { %v931_v16 = vmul.f32 %v312_v42, %v312_v42  ;;  %v311_v17 = vmax.f32 %v279_v6, 0.0  ;;  %v282_v21 = vsub.f32 1.0, %v250_v1  ;;  %v249_v2 = vsub.f32 %v820_v34, %v196_v46 }
  0xbd   :  { %v503_v35 = vadd.f32 %v502_v3, %v472_v11  ;;  %v432_v18 = vadd.f32 %v611_v36, %v431_v7  ;;  %622 = vpow2.f32 %v395_v13  ;;  %v221_v55 = vpop.permute.xlu1 %220  ;;  %v615_v59 = vpop.eup %614  ;;  %v252_v23 = vsub.f32 %v820_v34, %v211_v60 }
  0xbe   :  { %624 = vpow2.f32 %v397_v4  ;;  %v933_v22 = vmul.f32 %v311_v17, %v311_v17  ;;  %v401_v62 = vmul.f32 1.442695, %v931_v16  ;;  %v314_v26 = vmax.f32 %v282_v21, 0.0  ;;  %v216_v12 = vpop.permute.xlu0 %215 }
  0xbf   :  { %v617_v24 = vpop.eup %616  ;;  %v504_v10 = vadd.f32 %v503_v35, %v473_v15  ;;  %v251_v27 = vsub.f32 %v820_v34, %v206_v14  ;;  %v254_v8 = vsub.f32 %v820_v34, %v221_v55  ;;  %v281_v32 = vsub.f32 1.0, %v249_v2 }
  0xc0   :  { %v433_v29 = vadd.f32 %v617_v24, %v432_v18  ;;  %v474_v30 = vmul.f32 %v617_v24, %v906_v25  ;;  %v399_v54 = vmul.f32 1.442695, %v933_v22  ;;  %v942_v31 = vmul.f32 %v314_v26, %v314_v26 }
  0xc1   :  { %v284_v33 = vsub.f32 1.0, %v252_v23  ;;  %v283_v37 = vsub.f32 1.0, %v251_v27  ;;  %v475_v38 = vmul.f32 %v615_v59, %v899_v5  ;;  %v313_v41 = vmax.f32 %v281_v32, 0.0 }
  0xc2   :  { %v505_v39 = vadd.f32 %v504_v10, %v474_v30  ;;  %v434_v40 = vadd.f32 %v615_v59, %v433_v29  ;;  %626 = vpow2.f32 %v399_v54  ;;  %v405_v45 = vmul.f32 1.442695, %v942_v31 }
  0xc3   :  { %628 = vpow2.f32 %v401_v62  ;;  %v316_v20 = vmax.f32 %v284_v33, 0.0  ;;  %v315_v43 = vmax.f32 %v283_v37, 0.0  ;;  %v619_v25 = vpop.eup %618  ;;  %v286_v46 = vsub.f32 1.0, %v254_v8 }
  0xc4   :  { %v506_v44 = vadd.f32 %v505_v39, %v475_v38  ;;  %v253_v47 = vsub.f32 %v820_v34, %v216_v12  ;;  %v345_v50 = vmul.f32 %v313_v41, %v313_v41  ;;  %v477_v42 = vmul.f32 %v619_v25, %v912_v9 }
  0xc5   :  { %v621_v49 = vpop.eup %620  ;;  %v348_v51 = vmul.f32 %v316_v20, %v316_v20  ;;  %v347_v52 = vmul.f32 %v315_v43, %v315_v43  ;;  %v318_v57 = vmax.f32 %v286_v46, 0.0  ;;  %630 = vpow2.f32 %v405_v45 }
  0xc6   :  { %v435_v56 = vadd.f32 %v621_v49, %v434_v40  ;;  %v476_v5 = vmul.f32 %v621_v49, %v918_v53  ;;  %v285_v19 = vsub.f32 1.0, %v253_v47  ;;  %v403_v48 = vmul.f32 1.442695, %v345_v50 }
  0xc7   :  { %v623_v58 = vpop.eup %622  ;;  %v407_v36 = vmul.f32 1.442695, %v347_v52  ;;  %v409_v34 = vmul.f32 1.442695, %v348_v51  ;;  %v350_v28 = vmul.f32 %v318_v57, %v318_v57 }
  0xc8   :  { %v625_v63 = vpop.eup %624  ;;  %v507_v1 = vadd.f32 %v506_v44, %v476_v5  ;;  %v436_v60 = vadd.f32 %v619_v25, %v435_v56  ;;  %632 = vpow2.f32 %v403_v48  ;;  %v317_v3 = vmax.f32 %v285_v19, 0.0 }
  0xc9   :  { %v478_v6 = vmul.f32 %v623_v58, %v924_v0  ;;  %634 = vpow2.f32 %v407_v36  ;;  %v479_v13 = vmul.f32 %v625_v63, %v920_v61  ;;  %v413_v9 = vmul.f32 1.442695, %v350_v28 }
  0xca   :  { %v437_v4 = vadd.f32 %v623_v58, %v436_v60  ;;  %v508_v7 = vadd.f32 %v507_v1, %v477_v42  ;;  %v349_v53 = vmul.f32 %v317_v3, %v317_v3  ;;  %636 = vpow2.f32 %v409_v34  ;;  %v455_v58 = vld [vmem:[#allocation3] sm:$0x1]  ;;  %v532_v1 = vld [vmem:[%s983_s2] sm:$0x1] }
  0xcb   :  { %v533_v34 = vmul.f32 0.9, %v532_v1 }
  0xcc   :  { %v627_v11 = vpop.eup %626  ;;  %v509_v14 = vadd.f32 %v508_v7, %v478_v6  ;;  %v438_v15 = vadd.f32 %v625_v63, %v437_v4  ;;  %v411_v35 = vmul.f32 1.442695, %v349_v53 }
  0xcd   :  { %v629_v17 = vpop.eup %628  ;;  %v480_v21 = vmul.f32 %v627_v11, %v933_v22 }
  0xce   :  { %v439_v18 = vadd.f32 %v627_v11, %v438_v15  ;;  %v510_v55 = vadd.f32 %v509_v14, %v479_v13  ;;  %638 = vpow2.f32 %v411_v35  ;;  %v481_v59 = vmul.f32 %v629_v17, %v931_v16 }
  0xcf   :  { %640 = vpow2.f32 %v413_v9  ;;  %v631_v23 = vpop.eup %630 }
  0xd0   :  { %v511_v0 = vadd.f32 %v510_v55, %v480_v21  ;;  %v440_v2 = vadd.f32 %v629_v17, %v439_v18  ;;  %v483_v27 = vmul.f32 %v631_v23, %v942_v31 }
  0xd2   :  { %v512_v24 = vadd.f32 %v511_v0, %v481_v59  ;;  %v633_v10 = vpop.eup %632 }
  0xd3   :  { %v441_v61 = vadd.f32 %v633_v10, %v440_v2  ;;  %v482_v62 = vmul.f32 %v633_v10, %v345_v50  ;;  %v635_v26 = vpop.eup %634 }
  0xd4   :  { %v637_v54 = vpop.eup %636  ;;  %v484_v22 = vmul.f32 %v635_v26, %v347_v52 }
  0xd5   :  { %v513_v29 = vadd.f32 %v512_v24, %v482_v62  ;;  %v442_v30 = vadd.f32 %v631_v23, %v441_v61  ;;  %v485_v37 = vmul.f32 %v637_v54, %v348_v51  ;;  %v415_v51 = vld [vmem:[#allocation2] sm:$0x1] }
  0xd7   :  { %v443_v8 = vadd.f32 %v635_v26, %v442_v30  ;;  %v514_v32 = vadd.f32 %v513_v29, %v483_v27 }
  0xd8   :  { %v639_v33 = vpop.eup %638 }
  0xd9   :  { %v515_v16 = vadd.f32 %v514_v32, %v484_v22  ;;  %v444_v12 = vadd.f32 %v637_v54, %v443_v8  ;;  %v641_v38 = vpop.eup %640  ;;  %v486_v40 = vmul.f32 %v639_v33, %v349_v53 }
  0xda   :  { %v487_v20 = vmul.f32 %v641_v38, %v350_v28 }
  0xdb   :  { %v445_v39 = vadd.f32 %v639_v33, %v444_v12  ;;  %v516_v41 = vadd.f32 %v515_v16, %v485_v37 }
  0xdd   :  { %v446_v43 = vadd.f32 %v641_v38, %v445_v39  ;;  %v517_v25 = vadd.f32 %v516_v41, %v486_v40 }
  0xdf   :  { %v447_v44 = vrot.slane %v446_v43, 4  ;;  %v518_v45 = vadd.f32 %v517_v25, %v487_v20 }
  0xe1   :  { %v448_v31 = vadd.f32 %v447_v44, %v446_v43  ;;  %v519_v46 = vrot.slane %v518_v45, 4 }
  0xe3   :  { %v449_v47 = vrot.slane %v448_v31, 2  ;;  %v520_v49 = vadd.f32 %v519_v46, %v518_v45 }
  0xe5   :  { %v450_v50 = vadd.f32 %v449_v47, %v448_v31  ;;  %v521_v52 = vrot.slane %v520_v49, 2 }
  0xe7   :  { %v451_v56 = vrot.slane %v450_v50, 1  ;;  %v522_v5 = vadd.f32 %v521_v52, %v520_v49 }
  0xe9   :  { %v452_v57 = vadd.f32 %v451_v56, %v450_v50  ;;  %v523_v19 = vrot.slane %v522_v5, 1 }
  0xeb   :  { %v453_v48 = vadd.f32 %v452_v57, %v415_v51  ;;  %v524_v36 = vadd.f32 %v523_v19, %v522_v5 }
  0xed   :  { %454 = vst [vmem:[#allocation2] sm:$0x1] %v453_v48  ;;  %v525_v63 = vadd.f32 %v524_v36, %v455_v58 }
  0xef   :  { %526 = vst [vmem:[#allocation3] sm:$0x1] %v525_v63 }
  0xf4   :  { %v530_v42 = vld [vmem:[#allocation2] sm:$0x1] }
  0xf5   :  { %v571_v60 = vadd.f32 -246.0, %v530_v42 }
  0xf7   :  { %v534_v28 = vmul.f32 0.1, %v571_v60 }
  0xf9   :  { %v535_v3 = vmul.f32 0.1, %v534_v28 }
  0xfb   :  { %v536_v4 = vadd.f32 %v535_v3, %v533_v34 }
  0xfd   :  { %537 = vst [vmem:[#allocation4] sm:$0x1] %v536_v4  ;;  %642 = vrcp.f32 %v536_v4 }
  0xfe   :  { %655 = shalt.err (!%p652_p4)
}
  0xff   :  { %s656_s8 = scalar_lea.hbm %s984_s3, 16 }
 0x100   :  { %p657_p5 = scmp.ne.s32.totalorder %s984_s3, %s656_s8  ;;  %p660_p6 = scmp.lt.u32.totalorder %s656_s8, %s984_s3 }
 0x102   :  { %p662_p7 = pnand %p660_p6, %p657_p5 }
 0x104   :  { %665 = shalt.err (!%p662_p7)
}
 0x105   :  { %551 = dma.vmem_to_hbm [thread:$0]  %s549_s30, 16, %s984_s3, [#allocation5]   ;;  %v538_v7 = vld [vmem:[#allocation3] sm:$0x1] }
 0x106   :  { %s695_s15 = smov [#allocation6]  }
 0x107   :  { %s558_s16 = sshll.u32 %s695_s15, 4  ;;  %v643_v6 = vpop.eup %642  ;;  %s559_s16 = int_to_ptr.vmem [resolvable:$true] %s558_s16 }
 0x108   :  { %v540_v53 = vmul.f32 %v643_v6, %v538_v7  ;;  %s666_s17 = scalar_lea.vmem %s559_s16, 16  ;;  %s670_s18 = scalar_lea.vmem %s559_s16, 32 }
 0x109   :  { %p667_p8 = scmp.ne.s32.totalorder %s559_s16, %s666_s17  ;;  %p671_p9 = scmp.lt.s32.totalorder %s559_s16, %s559_s16 }
 0x10a   :  { %541 = vst [vmem:[#allocation6] sm:$0x1] %v540_v53  ;;  %p672_p10 = scmp.lt.s32.totalorder %s670_s18, %s666_s17 }
 0x10c   :  { %p673_p11 = por %p672_p10, %p671_p9 }
 0x10e   :  { %p674_p12 = pnand %p673_p11, %p667_p8 }
 0x110   :  { %677 = shalt.err (!%p674_p12)
}
 0x111   :  { %s678_s21 = scalar_lea.hbm %s985_s4, 16 }
 0x112   :  { %p679_p13 = scmp.ne.s32.totalorder %s985_s4, %s678_s21  ;;  %p682_p0 = scmp.lt.u32.totalorder %s678_s21, %s985_s4 }
 0x114   :  { %p684_p1 = pnand %p682_p0, %p679_p13 }
 0x116   :  { %687 = shalt.err (!%p684_p1)
}
 0x117   :  { %561 = dma.vmem_to_hbm [thread:$0]  %s559_s16, 16, %s985_s4, [#allocation7]  }
 0x118   :  { %688 = dma.done.wait [#allocation5], 16  }
 0x119   :  { %689 = vsyncadd [#allocation5], 4294967280 }
 0x11a   :  { %690 = dma.done.wait [#allocation7], 16  }
 0x11b   :  { %691 = vsyncadd [#allocation7], 4294967280 }
 0x11c   :  { %568 = vsyncpa [#allocation5], 1 }
 0x11d   :  { %569 = vsyncpa [#allocation7], 1 }

</bundles_post_ra>
